<compile_context>
chip_gen: v5e
topology: v5e:2x2
jax: 0.10.0
libtpu: 0.0.40
codegen_flags: <defaults>
</compile_context>

<pallas_src>
import functools
import math

import jax
import jax.numpy as jnp
from jax import lax
from jax.experimental import pallas as pl
from jax.experimental.pallas import tpu as pltpu


def _round_up(x, m):
    return (x + m - 1) // m * m


def _pick_tile(dim, candidates):
    for c in candidates:
        if dim % c == 0:
            return c
    return None


# ----------------------------------------------------------------------------
# Pallas GEMM (+bias) kernel: bf16 operands on the MXU, fp32 accumulator,
# bf16 output (stored lane-dense, >=128 wide).
# ----------------------------------------------------------------------------
def _matmul_bias_kernel(a_ref, b_ref, bias_ref, o_ref, acc_ref):
    @pl.when(pl.program_id(2) == 0)
    def _():
        acc_ref[...] = jnp.zeros_like(acc_ref)

    acc_ref[...] += jnp.dot(a_ref[...], b_ref[...],
                            preferred_element_type=jnp.float32)

    @pl.when(pl.program_id(2) == pl.num_programs(2) - 1)
    def _():
        o_ref[...] = (acc_ref[...] + bias_ref[...]).astype(o_ref.dtype)


def _plan_m(M):
    for c in (512, 256, 128, 64, 32, 16):
        if M % c == 0:
            return M, c
    if M <= 1024:
        Mp = _round_up(M, 8)
        return Mp, Mp                     # single full-M block
    Mp = _round_up(M, 256)
    return Mp, 256


def _plan_n(N):
    # Never emit a 64-lane-wide output block: pad N to a multiple of 128.
    Np = _round_up(max(N, 128), 128)
    TN = 256 if Np % 256 == 0 else 128
    return Np, TN


def _plan_k(K):
    tk = _pick_tile(K, (2048, 1024, 512, 256, 128))
    if tk is not None:
        return K, tk
    if K <= 2048:
        return K, K                       # single full-K block, no padded copy
    return _round_up(K, 128), 128


def matmul_bias(a, b, bias):
    """(a @ b) + bias with a tiled Pallas MXU kernel. a:[M,K], b:[K,N], bias:[N]."""
    M, K = a.shape
    _, N = b.shape
    Mp, TM = _plan_m(M)
    Np, TN = _plan_n(N)
    Kp, TK = _plan_k(K)

    a = a.astype(jnp.bfloat16)            # no-op when inputs already bf16
    b = b.astype(jnp.bfloat16)
    bias2 = bias.astype(jnp.float32).reshape(1, N)
    if (Mp, Kp) != (M, K):
        a = jnp.pad(a, ((0, Mp - M), (0, Kp - K)))
    if (Kp, Np) != (K, N):
        b = jnp.pad(b, ((0, Kp - K), (0, Np - N)))
    if Np != N:
        bias2 = jnp.pad(bias2, ((0, 0), (0, Np - N)))

    grid = (Mp // TM, Np // TN, Kp // TK)
    out = pl.pallas_call(
        _matmul_bias_kernel,
        out_shape=jax.ShapeDtypeStruct((Mp, Np), jnp.bfloat16),
        grid=grid,
        in_specs=[
            pl.BlockSpec((TM, TK), lambda i, j, k: (i, k)),
            pl.BlockSpec((TK, TN), lambda i, j, k: (k, j)),
            pl.BlockSpec((1, TN), lambda i, j, k: (0, j)),
        ],
        out_specs=pl.BlockSpec((TM, TN), lambda i, j, k: (i, j)),
        scratch_shapes=[pltpu.VMEM((TM, TN), jnp.float32)],
        compiler_params=pltpu.CompilerParams(
            dimension_semantics=("parallel", "parallel", "arbitrary"),
            vmem_limit_bytes=32 * 1024 * 1024),
    )(a, b, bias2)
    if (Mp, Np) != (M, N):
        out = out[:M, :N]
    return out


# ----------------------------------------------------------------------------
# Pallas InstanceNorm3d: S-tiled stats (sum / sum-sq, fp32) + tiled apply.
# ----------------------------------------------------------------------------
def _in_stats_kernel(x_ref, o_ref, acc_ref):
    @pl.when(pl.program_id(1) == 0)
    def _():
        acc_ref[...] = jnp.zeros_like(acc_ref)

    x = x_ref[0].astype(jnp.float32)
    acc_ref[0:1, :] += jnp.sum(x, axis=0, keepdims=True)
    acc_ref[1:2, :] += jnp.sum(x * x, axis=0, keepdims=True)

    @pl.when(pl.program_id(1) == pl.num_programs(1) - 1)
    def _():
        o_ref[0] = acc_ref[...]


def _in_apply_kernel(x_ref, st_ref, o_ref, *, inv_s, relu):
    x = x_ref[0].astype(jnp.float32)
    mean = st_ref[0, 0:1, :] * inv_s
    var = jnp.maximum(st_ref[0, 1:2, :] * inv_s - mean * mean, 0.0)
    y = (x - mean) * lax.rsqrt(var + 1e-5)
    if relu:
        y = jnp.maximum(y, 0.0)
    o_ref[0] = y.astype(o_ref.dtype)


def _in_apply_res_kernel(x_ref, st_ref, r_ref, o_ref, *, inv_s, relu):
    x = x_ref[0].astype(jnp.float32)
    mean = st_ref[0, 0:1, :] * inv_s
    var = jnp.maximum(st_ref[0, 1:2, :] * inv_s - mean * mean, 0.0)
    y = (x - mean) * lax.rsqrt(var + 1e-5) + r_ref[0].astype(jnp.float32)
    if relu:
        y = jnp.maximum(y, 0.0)
    o_ref[0] = y.astype(o_ref.dtype)


def instance_norm_act(x, relu=True, residual=None):
    """InstanceNorm3d (affine=False, eps=1e-5) [+ residual] [+ ReLU]; x: NDHWC bf16."""
    N, D, H, W, C = x.shape
    S = D * H * W
    xt = x.reshape(N, S, C)
    rt = residual.reshape(N, S, C) if residual is not None else None
    Sp = _round_up(S, 8)
    if Sp != S:                              # zero padding: does not bias sum/sumsq
        xt = jnp.pad(xt, ((0, 0), (0, Sp - S), (0, 0)))
        if rt is not None:
            rt = jnp.pad(rt, ((0, 0), (0, Sp - S), (0, 0)))
    Sb = _pick_tile(Sp, (2048, 1024, 512, 256, 128, 64, 32, 16, 8))
    grid_s = Sp // Sb

    x_spec = pl.BlockSpec((1, Sb, C), lambda n, s: (n, s, 0))
    st_spec = pl.BlockSpec((1, 2, C), lambda n, s: (n, 0, 0))

    stats = pl.pallas_call(
        _in_stats_kernel,
        out_shape=jax.ShapeDtypeStruct((N, 2, C), jnp.float32),
        grid=(N, grid_s),
        in_specs=[x_spec],
        out_specs=st_spec,
        scratch_shapes=[pltpu.VMEM((2, C), jnp.float32)],
        compiler_params=pltpu.CompilerParams(
            dimension_semantics=("parallel", "arbitrary")),
    )(xt)

    kw = dict(inv_s=1.0 / S, relu=relu)
    common = dict(
        out_shape=jax.ShapeDtypeStruct((N, Sp, C), jnp.bfloat16),
        grid=(N, grid_s),
        out_specs=x_spec,
        compiler_params=pltpu.CompilerParams(
            dimension_semantics=("parallel", "parallel")),
    )
    if residual is None:
        out = pl.pallas_call(functools.partial(_in_apply_kernel, **kw),
                             in_specs=[x_spec, st_spec], **common)(xt, stats)
    else:
        out = pl.pallas_call(functools.partial(_in_apply_res_kernel, **kw),
                             in_specs=[x_spec, st_spec, x_spec], **common)(xt, stats, rt)
    if Sp != S:
        out = out[:, :S]
    return out.reshape(N, D, H, W, C)


# ----------------------------------------------------------------------------
# Pallas LayerNorm over the channel dim (torch flatten(2).transpose semantics).
# ----------------------------------------------------------------------------
def _layernorm_kernel(x_ref, g_ref, b_ref, o_ref, *, inv_c):
    x = x_ref[0].astype(jnp.float32)
    m = jnp.sum(x, axis=-1, keepdims=True) * inv_c
    s2 = jnp.sum(x * x, axis=-1, keepdims=True) * inv_c
    var = jnp.maximum(s2 - m * m, 0.0)
    y = (x - m) * lax.rsqrt(var + 1e-5) * g_ref[...] + b_ref[...]
    o_ref[0] = y.astype(o_ref.dtype)


def layernorm_channels(x, gamma, beta):
    N, D, H, W, C = x.shape
    S = D * H * W
    xt = x.reshape(N, S, C)
    Sp = _round_up(S, 8)
    if Sp != S:
        xt = jnp.pad(xt, ((0, 0), (0, Sp - S), (0, 0)))
    Sb = _pick_tile(Sp, (2048, 1024, 512, 256, 128, 64, 32, 16, 8))
    out = pl.pallas_call(
        functools.partial(_layernorm_kernel, inv_c=1.0 / C),
        out_shape=jax.ShapeDtypeStruct((N, Sp, C), jnp.bfloat16),
        grid=(N, Sp // Sb),
        in_specs=[pl.BlockSpec((1, Sb, C), lambda n, s: (n, s, 0)),
                  pl.BlockSpec((1, C), lambda n, s: (0, 0)),
                  pl.BlockSpec((1, C), lambda n, s: (0, 0))],
        out_specs=pl.BlockSpec((1, Sb, C), lambda n, s: (n, s, 0)),
        compiler_params=pltpu.CompilerParams(
            dimension_semantics=("parallel", "parallel")),
    )(xt, gamma.reshape(1, C), beta.reshape(1, C))
    if Sp != S:
        out = out[:, :S]
    return out.reshape(N, D, H, W, C)


# ----------------------------------------------------------------------------
# Conv / pool / upsample wrappers (GEMM runs in the Pallas kernel).
# ----------------------------------------------------------------------------
def _use_xla_conv(k, cin):
    # Large-kernel and/or very-low-Cin convs: a k^3 im2col patch matrix in HBM
    # costs k^3 x the input traffic, so route these through XLA's native conv
    # emitter (no HBM im2col).  TODO(synk): Pallas tap-streaming direct conv.
    return k >= 4 or (k == 3 and cin < 16)


def _extract_patches(x, k, stride, padding):
    """Patch matrix [N,Do,Ho,Wo, k^3*C], columns ordered (kd, kh, kw, cin)."""
    if padding > 0:
        x = jnp.pad(x, ((0, 0), (padding, padding), (padding, padding),
                        (padding, padding), (0, 0)))
    N, Dp, Hp, Wp, C = x.shape
    Do = (Dp - k) // stride + 1
    Ho = (Hp - k) // stride + 1
    Wo = (Wp - k) // stride + 1
    if k == 1:
        return (x[:, :Do * stride:stride, :Ho * stride:stride,
                  :Wo * stride:stride, :], (Do, Ho, Wo))
    slabs = []
    for a in range(k):
        for b in range(k):
            for c in range(k):
                slabs.append(x[:, a:a + (Do - 1) * stride + 1:stride,
                               b:b + (Ho - 1) * stride + 1:stride,
                               c:c + (Wo - 1) * stride + 1:stride, :])
    return jnp.concatenate(slabs, axis=-1), (Do, Ho, Wo)


def conv3d(x, p, stride, padding):
    """x: [N,D,H,W,Cin] bf16; p from prep_conv(). Returns bf16 NDHWC."""
    x = x.astype(jnp.bfloat16)
    k, cin, cout = p["k"], p["cin"], p["cout"]
    if _use_xla_conv(k, cin):
        y = lax.conv_general_dilated(
            x, p["w5"], window_strides=(stride,) * 3,
            padding=[(padding, padding)] * 3,
            dimension_numbers=("NDHWC", "DHWIO", "NDHWC"),
            preferred_element_type=jnp.float32)
        return (y + p["b"]).astype(jnp.bfloat16)
    a, (Do, Ho, Wo) = _extract_patches(x, k, stride, padding)
    N = x.shape[0]
    y = matmul_bias(a.reshape(N * Do * Ho * Wo, -1), p["wm"], p["b"])
    return y.reshape(N, Do, Ho, Wo, cout)


def conv_transpose3d_2x2(x, p):
    """ConvTranspose3d kernel=2 stride=2; p: {'wm': [Cin, 8*Cout], 'b8', 'cout'}."""
    N, D, H, W, Cin = x.shape
    Cout = p["cout"]
    y = matmul_bias(x.reshape(-1, Cin), p["wm"], p["b8"])   # cols (a,b,c,cout), bf16
    y = y.reshape(N, D, H, W, 2, 2, 2, Cout)
    y = y.transpose(0, 1, 4, 2, 5, 3, 6, 7).reshape(N, 2 * D, 2 * H, 2 * W, Cout)
    return y


def maxpool3d(x, k, s, pad):
    return lax.reduce_window(
        x, jnp.array(-jnp.inf, x.dtype), lax.max,
        window_dimensions=(1, k, k, k, 1),
        window_strides=(1, s, s, s, 1),
        padding=((0, 0), (pad, pad), (pad, pad), (pad, pad), (0, 0)))


def upsample_trilinear_x2(x):
    """nn.Upsample(scale_factor=2, mode='trilinear', align_corners=True), NDHWC."""
    dt = x.dtype
    x = x.astype(jnp.float32)

    def lin_axis(v, axis):
        s = v.shape[axis]
        out = 2 * s
        if s == 1:
            return jnp.repeat(v, 2, axis=axis)
        pos = jnp.arange(out, dtype=jnp.float32) * ((s - 1) / (out - 1))
        lo = jnp.floor(pos).astype(jnp.int32)
        hi = jnp.minimum(lo + 1, s - 1)
        w = pos - lo.astype(jnp.float32)
        shape = [1] * v.ndim
        shape[axis] = out
        w = w.reshape(shape)
        return (jnp.take(v, lo, axis=axis) * (1.0 - w)
                + jnp.take(v, hi, axis=axis) * w)

    for ax in (1, 2, 3):
        x = lin_axis(x, ax)
    return x.astype(dt)


# ----------------------------------------------------------------------------
# Deterministic parameters (shapes mirror torch __init__); weights converted
# once to GEMM / DHWIO layout in bf16.
# ----------------------------------------------------------------------------
class ParamGen:
    def __init__(self, seed=0):
        self.key = jax.random.PRNGKey(seed)
        self.i = 0

    def normal(self, shape, scale):
        k = jax.random.fold_in(self.key, self.i)
        self.i += 1
        return scale * jax.random.normal(k, shape, jnp.float32)

    def conv(self, cin, cout, k, bias=True):
        fan_in = cin * k ** 3
        return {"w": self.normal((cout, cin, k, k, k), 1.0 / math.sqrt(fan_in)),
                "b": self.normal((cout,), 0.01) if bias else None}

    def convT(self, cin, cout, k, bias=True):
        fan_in = cin * k ** 3
        return {"w": self.normal((cin, cout, k, k, k), 1.0 / math.sqrt(fan_in)),
                "b": self.normal((cout,), 0.01) if bias else None}

    def layernorm(self, c):
        return {"g": jnp.ones((c,), jnp.float32), "b": jnp.zeros((c,), jnp.float32)}


def prep_conv(c):
    """torch Conv3d weight [Cout,Cin,k,k,k] -> DHWIO bf16 + GEMM [K,Cout] bf16."""
    w, b = c["w"], c["b"]
    cout, cin, k = w.shape[0], w.shape[1], w.shape[2]
    w5 = jnp.transpose(w, (2, 3, 4, 1, 0)).astype(jnp.bfloat16)   # (kd,kh,kw,ci,co)
    wm = w5.reshape(k ** 3 * cin, cout)                           # rows (kd,kh,kw,ci)
    bias = (b if b is not None else jnp.zeros((cout,), jnp.float32)).astype(jnp.float32)
    return {"w5": w5, "wm": wm, "b": bias, "k": k, "cin": cin, "cout": cout}


def prep_convT2(c):
    """torch ConvTranspose3d weight [Cin,Cout,2,2,2] -> [Cin, 8*Cout], cols (a,b,c,cout)."""
    w, b = c["w"], c["b"]
    cin, cout = w.shape[0], w.shape[1]
    wm = jnp.transpose(w, (0, 2, 3, 4, 1)).reshape(cin, 8 * cout).astype(jnp.bfloat16)
    bias = (b if b is not None else jnp.zeros((cout,), jnp.float32)).astype(jnp.float32)
    return {"wm": wm, "b8": jnp.tile(bias, 8), "cout": cout}


def make_mscb(pg, cin, cout, kernel_sizes, norm_first):
    projs = []
    n = len(kernel_sizes)
    for i, ps in enumerate(kernel_sizes):
        dim = cout // 2 ** i if i == n - 1 else cout // 2 ** (i + 1)
        projs.append(prep_conv(pg.conv(cin, dim, ps, bias=True)))
    return {"projs": projs,
            "norm": pg.layernorm(cin if norm_first else cout),
            "norm_first": norm_first}


def make_resblock(pg, cin, cout):
    return {"conv1": prep_conv(pg.conv(cin, cout, 3, bias=False)),
            "conv2": prep_conv(pg.conv(cout, cout, 3, bias=False))}


def make_decoder(pg, cin, cout):
    return {"up": prep_convT2(pg.convT(cin, cout, 2, bias=True)),
            "conv": prep_conv(pg.conv(2 * cout, cout, 3, bias=True))}


def make_mformer(pg, in_ch, num_classes):
    ed = 64
    return {
        "conv_stem": prep_conv(pg.conv(in_ch, ed, 7, bias=False)),
        "MS1": make_mscb(pg, in_ch, ed, [2, 4, 8, 16], norm_first=False),
        "MS2": make_mscb(pg, ed, ed * 2, [2, 4], norm_first=True),
        "MS3": make_mscb(pg, ed * 2, ed * 4, [2, 4], norm_first=True),
        "MS4": make_mscb(pg, ed * 4, ed * 8, [2, 4], norm_first=True),
        "resblock1": make_resblock(pg, ed, ed),
        "downsample2": prep_conv(pg.conv(ed, ed * 2, 1, bias=False)),
        "resblock2_1": make_resblock(pg, ed, ed * 2),
        "resblock2_2": make_resblock(pg, ed * 2, ed * 2),
        "downsample3": prep_conv(pg.conv(ed * 2, ed * 4, 1, bias=False)),
        "resblock3_1": make_resblock(pg, ed * 2, ed * 4),
        "resblock3_2": make_resblock(pg, ed * 4, ed * 4),
        "downsample4": prep_conv(pg.conv(ed * 4, ed * 8, 1, bias=False)),
        "resblock4_1": make_resblock(pg, ed * 4, ed * 8),
        "resblock4_2": make_resblock(pg, ed * 8, ed * 8),
        "decode4": make_decoder(pg, 512, 256),
        "decode3": make_decoder(pg, 256, 128),
        "decode2": make_decoder(pg, 128, 64),
        "decode0": prep_conv(pg.conv(64, num_classes, 1, bias=False)),
    }


def make_fusion(pg, in_ch, n_classes):
    return {"c1": prep_conv(pg.conv(in_ch, 128, 3, bias=True)),
            "c2": prep_conv(pg.conv(128, 128, 3, bias=True)),
            "up": prep_convT2(pg.convT(128, 128, 2, bias=True)),
            "final": prep_conv(pg.conv(128, n_classes, 1, bias=True))}


def make_ma4bts(seed=0, model_tumor_input=2, model_gland_input=1,
                num_classes=3, model_tumor_out=3, model_gland_out=3):
    pg = ParamGen(seed)
    return {"tumor": make_mformer(pg, model_tumor_input, model_tumor_out),
            "gland": make_mformer(pg, model_gland_input, model_gland_out),
            "fusion": make_fusion(pg, num_classes + model_gland_out + model_tumor_out,
                                  num_classes),
            "tumor_in": model_tumor_input, "gland_in": model_gland_input}


# ----------------------------------------------------------------------------
# Forward passes (all activations channels-last bf16: [N, D, H, W, C])
# ----------------------------------------------------------------------------
def mscb_fwd(p, x):
    if p["norm_first"]:
        x = layernorm_channels(x, p["norm"]["g"], p["norm"]["b"])
    xs = [conv3d(x, proj, stride=2, padding=(proj["k"] - 2) // 2)
          for proj in p["projs"]]
    x = jnp.concatenate(xs, axis=-1)
    if not p["norm_first"]:
        x = layernorm_channels(x, p["norm"]["g"], p["norm"]["b"])
    return x


def resblock_fwd(p, x, stride0=1, downsample=None):
    out = conv3d(x, p["conv1"], stride=stride0, padding=1)
    out = instance_norm_act(out, relu=True)
    out = conv3d(out, p["conv2"], stride=1, padding=1)
    if downsample is not None:
        identity = conv3d(x, downsample, stride=2, padding=0)
        identity = instance_norm_act(identity, relu=False)
    else:
        identity = x
    # bn2(out) + identity, then ReLU -- fused in the Pallas norm kernel.
    return instance_norm_act(out, relu=True, residual=identity)


def conv_stem_fwd(p, x):
    x = conv3d(x, p, stride=1, padding=3)
    x = instance_norm_act(x, relu=True)
    return maxpool3d(x, k=3, s=2, pad=1)


def decoder_fwd(p, x1, x2):
    x1 = conv_transpose3d_2x2(x1, p["up"])
    x = jnp.concatenate([x1, x2], axis=-1)
    x = conv3d(x, p["conv"], stride=1, padding=1)
    return instance_norm_act(x, relu=True)


def mformer_fwd(p, x):
    encoder = []
    ms1 = mscb_fwd(p["MS1"], x)
    x = conv_stem_fwd(p["conv_stem"], x)
    for _ in range(3):
        x = resblock_fwd(p["resblock1"], x)
    x = x + ms1
    # TODO(synk): swin BasicLayer not provided in the source -> identity.
    encoder.append(x)

    ms2 = mscb_fwd(p["MS2"], x)
    for i in range(4):
        x = (resblock_fwd(p["resblock2_1"], x, 2, p["downsample2"]) if i == 0
             else resblock_fwd(p["resblock2_2"], x))
    x = x + ms2
    encoder.append(x)

    ms3 = mscb_fwd(p["MS3"], x)
    for i in range(6):
        x = (resblock_fwd(p["resblock3_1"], x, 2, p["downsample3"]) if i == 0
             else resblock_fwd(p["resblock3_2"], x))
    x = x + ms3
    encoder.append(x)

    ms4 = mscb_fwd(p["MS4"], x)
    for i in range(3):
        x = (resblock_fwd(p["resblock4_1"], x, 2, p["downsample4"]) if i == 0
             else resblock_fwd(p["resblock4_2"], x))
    x = x + ms4
    encoder.append(x)

    d4 = decoder_fwd(p["decode4"], encoder[3], encoder[2])
    d3 = decoder_fwd(p["decode3"], d4, encoder[1])
    d2 = decoder_fwd(p["decode2"], d3, encoder[0])
    # decode0: 1x1 conv commutes with the linear bias-free trilinear upsample;
    # doing the conv first means the upsample only touches num_classes channels.
    out = conv3d(d2, p["decode0"], stride=1, padding=0)
    out = upsample_trilinear_x2(out)
    return out


def fusion_fwd(p, in1, in2, in3):
    x = jnp.concatenate([in1, in2, in3], axis=-1)
    x = instance_norm_act(conv3d(x, p["c1"], 1, 1), relu=True)
    x = maxpool3d(x, 2, 2, 0)
    x = instance_norm_act(conv3d(x, p["c2"], 1, 1), relu=True)
    x = conv_transpose3d_2x2(x, p["up"])
    # NOTE: the PyTorch FusionBlcok reuses self.Conv3d3x3_2 (same weights) here.
    x = instance_norm_act(conv3d(x, p["c2"], 1, 1), relu=True)
    return conv3d(x, p["final"], 1, 0)


def ma4bts_fwd(params, x, return_all=False):
    ti, gi = params["tumor_in"], params["gland_in"]
    x = jnp.transpose(x, (0, 2, 3, 4, 1)).astype(jnp.bfloat16)   # NCDHW -> NDHWC once
    x1 = x[..., :ti]
    x2 = x[..., ti:ti + gi]
    x3 = x[..., ti + gi:]
    tumor = mformer_fwd(params["tumor"], x1)
    gland = mformer_fwd(params["gland"], x2)
    fusion = fusion_fwd(params["fusion"], tumor, gland, x3)

    def to_ncdhw(t):
        return jnp.transpose(t, (0, 4, 1, 2, 3)).astype(jnp.float32)

    if return_all:
        return [to_ncdhw(tumor), to_ncdhw(gland), to_ncdhw(fusion)]
    return to_ncdhw(fusion)


# ----------------------------------------------------------------------------
# Small runtime self-check of the Pallas-GEMM conv paths against lax.conv
# (guards the patch-column / weight-layout ordering, which would be silently
# wrong rather than slow if mismatched).
# ----------------------------------------------------------------------------
def _self_check_conv():
    key = jax.random.PRNGKey(123)
    cases = [
        dict(cin=16, cout=7, k=3, s=1, p=1, sp=6),
        dict(cin=16, cout=5, k=3, s=2, p=1, sp=8),
        dict(cin=4, cout=6, k=2, s=2, p=0, sp=8),
        dict(cin=3, cout=9, k=1, s=2, p=0, sp=8),
    ]
    for i, c in enumerate(cases):
        kx, kw, kb = jax.random.split(jax.random.fold_in(key, i), 3)
        x = jax.random.normal(kx, (1, c["sp"], c["sp"], c["sp"], c["cin"]), jnp.float32)
        w = jax.random.normal(kw, (c["cout"], c["cin"], c["k"], c["k"], c["k"]),
                              jnp.float32) / math.sqrt(c["cin"] * c["k"] ** 3)
        b = 0.1 * jax.random.normal(kb, (c["cout"],), jnp.float32)
        got = conv3d(x, prep_conv({"w": w, "b": b}), stride=c["s"],
                     padding=c["p"]).astype(jnp.float32)
        ref = lax.conv_general_dilated(
            x, jnp.transpose(w, (2, 3, 4, 1, 0)), (c["s"],) * 3,
            [(c["p"], c["p"])] * 3,
            dimension_numbers=("NDHWC", "DHWIO", "NDHWC")) + b
        err = float(jnp.max(jnp.abs(got - ref)))
        tol = 0.05 * float(jnp.max(jnp.abs(ref))) + 1e-2
        assert err <= tol, f"conv self-check failed: case={c} err={err} tol={tol}"


# ----------------------------------------------------------------------------
if __name__ == "__main__":
    _self_check_conv()

    # image_size must be divisible by 16 (four /2 stages); use a small 16^3 volume.
    # input channels = 2 (tumor) + 1 (gland) + 3 (extra, feeds the fusion block) = 6
    params = make_ma4bts(seed=0)
    key = jax.random.PRNGKey(0)
    x = jax.random.normal(key, (2, 6, 16, 16, 16), jnp.float32)

    out = ma4bts_fwd(params, x)
    out = jax.block_until_ready(out)

    assert out.shape == (2, 3, 16, 16, 16), out.shape
    assert bool(jnp.all(jnp.isfinite(out)))
    print("KERNEL_OK")
</pallas_src>

<mosaic_0001>
module attributes {stable_mosaic.version = 11 : i64} {
  func.func @_matmul_bias_kernel(%arg0: i32, %arg1: i32, %arg2: i32, %arg3: memref<216x432xbf16, #tpu.memory_space<vmem>>, %arg4: memref<432x128xbf16, #tpu.memory_space<vmem>>, %arg5: memref<1x128xf32, #tpu.memory_space<vmem>>, %arg6: memref<216x128xbf16, #tpu.memory_space<vmem>>, %arg7: memref<216x128xf32, #tpu.memory_space<vmem>>) attributes {dimension_semantics = [#tpu.dimension_semantics<parallel>, #tpu.dimension_semantics<parallel>, #tpu.dimension_semantics<arbitrary>], iteration_bounds = array<i64: 1, 1, 1>, scalar_prefetch = 0 : i64, scratch_operands = 1 : i64, tpu.core_type = #tpu.core_type<tc>, window_params = [{transform_indices = @transform_0, window_bounds = array<i64: 216, 432>}, {transform_indices = @transform_1, window_bounds = array<i64: 432, 128>}, {transform_indices = @transform_2, window_bounds = array<i64: 1, 128>}, {transform_indices = @transform_3, window_bounds = array<i64: 216, 128>}]} {
    %c0_i32 = arith.constant 0 : i32
    %0 = arith.cmpi eq, %arg2, %c0_i32 : i32
    %1 = arith.extui %0 : i1 to i32
    %c0_i32_0 = arith.constant 0 : i32
    %2 = arith.cmpi ne, %1, %c0_i32_0 : i32
    scf.if %2 {
      %cst_10 = arith.constant 0.000000e+00 : f32
      %12 = vector.broadcast %cst_10 : f32 to vector<216x128xf32>
      %c0_11 = arith.constant 0 : index
      %c0_12 = arith.constant 0 : index
      %13 = vector.load %arg7[%c0_11, %c0_12] : memref<216x128xf32, #tpu.memory_space<vmem>>, vector<216x128xf32>
      tpu.vector_store %arg7[%c0_11, %c0_12], %12 {strides = array<i32>} : memref<216x128xf32, #tpu.memory_space<vmem>>, vector<216x128xf32>,
    } else {
    }
    %c0 = arith.constant 0 : index
    %c0_1 = arith.constant 0 : index
    %3 = vector.load %arg7[%c0, %c0_1] : memref<216x128xf32, #tpu.memory_space<vmem>>, vector<216x128xf32>
    %c0_2 = arith.constant 0 : index
    %c0_3 = arith.constant 0 : index
    %4 = vector.load %arg3[%c0_2, %c0_3] : memref<216x432xbf16, #tpu.memory_space<vmem>>, vector<216x432xbf16>
    %c0_4 = arith.constant 0 : index
    %c0_5 = arith.constant 0 : index
    %5 = vector.load %arg4[%c0_4, %c0_5] : memref<432x128xbf16, #tpu.memory_space<vmem>>, vector<432x128xbf16>
    %cst = arith.constant dense<0.000000e+00> : vector<216x128xf32>
    %6 = tpu.matmul %4, %5, %cst {dimension_numbers = #tpu.dot_dimension_numbers<[1], [0], [0], [1], [0, 0, 1, 1], [], []>} : vector<216x432xbf16>, vector<432x128xbf16>, vector<216x128xf32> -> vector<216x128xf32>
    %7 = arith.addf %3, %6 : vector<216x128xf32>
    %c0_6 = arith.constant 0 : index
    %c0_7 = arith.constant 0 : index
    %8 = vector.load %arg7[%c0_6, %c0_7] : memref<216x128xf32, #tpu.memory_space<vmem>>, vector<216x128xf32>
    tpu.vector_store %arg7[%c0_6, %c0_7], %7 {strides = array<i32>} : memref<216x128xf32, #tpu.memory_space<vmem>>, vector<216x128xf32>,
    %c0_i32_8 = arith.constant 0 : i32
    %9 = arith.cmpi eq, %arg2, %c0_i32_8 : i32
    %10 = arith.extui %9 : i1 to i32
    %c0_i32_9 = arith.constant 0 : i32
    %11 = arith.cmpi ne, %10, %c0_i32_9 : i32
    scf.if %11 {
      %c0_10 = arith.constant 0 : index
      %c0_11 = arith.constant 0 : index
      %12 = vector.load %arg7[%c0_10, %c0_11] : memref<216x128xf32, #tpu.memory_space<vmem>>, vector<216x128xf32>
      %c0_12 = arith.constant 0 : index
      %c0_13 = arith.constant 0 : index
      %13 = vector.load %arg5[%c0_12, %c0_13] : memref<1x128xf32, #tpu.memory_space<vmem>>, vector<1x128xf32>
      %14 = vector.broadcast %13 : vector<1x128xf32> to vector<216x128xf32>
      %15 = arith.addf %12, %14 : vector<216x128xf32>
      %16 = arith.truncf %15 : vector<216x128xf32> to vector<216x128xbf16>
      %c0_14 = arith.constant 0 : index
      %c0_15 = arith.constant 0 : index
      %17 = vector.load %arg6[%c0_14, %c0_15] : memref<216x128xbf16, #tpu.memory_space<vmem>>, vector<216x128xbf16>
      tpu.vector_store %arg6[%c0_14, %c0_15], %16 {strides = array<i32>} : memref<216x128xbf16, #tpu.memory_space<vmem>>, vector<216x128xbf16>,
    } else {
    }
    return
  }
  func.func @transform_0(%arg0: i32, %arg1: i32, %arg2: i32) -> (i32, i32) {
    %c0_i32 = arith.constant 0 : i32
    return %arg0, %arg2 : i32, i32
  }
  func.func @transform_1(%arg0: i32, %arg1: i32, %arg2: i32) -> (i32, i32) {
    %c0_i32 = arith.constant 0 : i32
    return %arg2, %arg1 : i32, i32
  }
  func.func @transform_2(%arg0: i32, %arg1: i32, %arg2: i32) -> (i32, i32) {
    %c0_i32 = arith.constant 0 : i32
    %c0_i32_0 = arith.constant 0 : i32
    return %c0_i32, %arg1 : i32, i32
  }
  func.func @transform_3(%arg0: i32, %arg1: i32, %arg2: i32) -> (i32, i32) {
    %c0_i32 = arith.constant 0 : i32
    return %arg0, %arg1 : i32, i32
  }
}

</mosaic_0001>

<bundles_post_ra>
// kernel: tpu_custom_call.1
= control target key start
LH: loop header
LB: loop body
LE: loop exit
PB: predicated region body
PF: predicated region fallthrough
CT: control target
= control target key end

     0   :  { %8 = vsyncpa [#allocation4], 0  ;;  %s1840_s0 = inlined_call_operand.hbm [shape: bf16[216,432], index: 0, kind: input, shape index: {}]   ;;  %s1841_s1 = inlined_call_operand.hbm [shape: bf16[432,128], index: 1, kind: input, shape index: {}]   ;;  %s1842_s2 = inlined_call_operand.vmem [shape: f32[1,128], index: 2, kind: input, shape index: {}]   ;;  %s1843_s3 = inlined_call_operand.hbm [shape: bf16[216,128], index: 3, kind: output, shape index: {}]  }
   0x1   :  { %9 = vsyncpa [#allocation7], 0 }
   0x2   :  { %10 = vsyncpa [#allocation5], 0  ;;  %s15_s14 = sshll.u32 %s1840_s0, 4  ;;  %s1752_s15 = smov [#allocation3]   ;;  %s16_s14 = int_to_ptr.hbm [resolvable:$true] %s15_s14 }
   0x3   :  { %s17_s16 = sshll.u32 %s1752_s15, 4  ;;  %s28_s19 = sshll.u32 %s1841_s1, 4  ;;  %s18_s16 = int_to_ptr.vmem [resolvable:$true] %s17_s16  ;;  %s29_s19 = int_to_ptr.hbm [resolvable:$true] %s28_s19 }
   0x4   :  { %s1753_s20 = smov 256   ;;  %s1754_s21 = smov 16  }
   0x5   :  { %23 = dma.hbm_to_vmem [thread:$0]  %s16_s14, 6912, %s18_s16, [#allocation4], %s1753_s20, %s1753_s20, %s1754_s21  }
   0x6   :  { %s1755_s22 = smov [#allocation6]   ;;  %s1756_s24 = smov 64  }
   0x7   :  { %s30_s23 = sshll.u32 %s1755_s22, 4  ;;  %s1757_s25 = smov 4   ;;  %s31_s23 = int_to_ptr.vmem [resolvable:$true] %s30_s23 }
   0x8   :  { %36 = dma.hbm_to_vmem [thread:$0]  %s29_s19, 3456, %s31_s23, [#allocation7], %s1756_s24, %s1756_s24, %s1757_s25  }
   0x9   :  { %1746 = dma.done.wait [#allocation4], 6912  }
   0xa   :  { %1747 = vsyncadd [#allocation4], 4294960384 }
   0xb   :  { %1748 = dma.done.wait [#allocation7], 3456  }
   0xc   :  { %1749 = vsyncadd [#allocation7], 4294963840  ;;  %v1569_v0 = vld [vmem:[#allocation6 + $0x38] sm:$0xff]  ;;  %v1568_v3 = vld [vmem:[#allocation6 + $0x30] sm:$0xff]  ;;  %vm636_vm0 = vcmask 392192   ;;  %s1166_s29 = sshll.u32 %s1843_s3, 4  ;;  %s1167_s29 = int_to_ptr.hbm [resolvable:$true] %s1166_s29 }
   0xd   :  { %v1577_v1 = vld [vmem:[#allocation6 + $0x78] sm:$0xff]  ;;  %679 = vmatpush.bf16.msra.mxu0 %v1569_v0  ;;  %v1576_v4 = vld [vmem:[#allocation6 + $0x70] sm:$0xff]  ;;  %v1567_v7 = vld [vmem:[#allocation6 + $0x28] sm:$0xff] }
   0xe   :  { %v1585_v2 = vld [vmem:[#allocation6 + $0xb8] sm:$0xff]  ;;  %757 = vmatpush.bf16.msra.mxu1 %v1577_v1  ;;  %v1584_v5 = vld [vmem:[#allocation6 + $0xb0] sm:$0xff]  ;;  %v1575_v8 = vld [vmem:[#allocation6 + $0x68] sm:$0xff] }
   0xf   :  { %835 = vmatpush.bf16.msra.mxu2 %v1585_v2  ;;  %v1588_v6 = vld [vmem:[#allocation6 + $0xd0] sm:$0xff]  ;;  %v1583_v9 = vld [vmem:[#allocation6 + $0xa8] sm:$0xff]  ;;  %v1566_v11 = vld [vmem:[#allocation6 + $0x20] sm:$0xff] }
  0x10   :  { %918 = vmatpush.bf16.msra.mxu3 %v1588_v6  ;;  %v1587_v10 = vld [vmem:[#allocation6 + $0xc8] sm:$0xff]  ;;  %v1574_v12 = vld [vmem:[#allocation6 + $0x60] sm:$0xff]  ;;  %v1511_v15 = vld [vmem:[#allocation3 + $0xc] sm:$0xf] }
  0x11   :  { %680 = vmatpush.bf16.msra.mxu0 %v1568_v3  ;;  %v1582_v13 = vld [vmem:[#allocation6 + $0xa0] sm:$0xff]  ;;  %v1192_v16 = vld [vmem:[#allocation3 + $0x18] sm:$0xf0]  ;;  %v1565_v17 = vld [vmem:[#allocation6 + $0x18] sm:$0xff] }
  0x12   :  { %758 = vmatpush.bf16.msra.mxu1 %v1576_v4  ;;  %v1586_v14 = vld [vmem:[#allocation6 + $0xc0] sm:$0xff]  ;;  %v1573_v18 = vld [vmem:[#allocation6 + $0x58] sm:$0xff]  ;;  %v1195_v20 = vor.u32 %v1511_v15, %v1192_v16  ;;  %v1564_v21 = vld [vmem:[#allocation6 + $0x10] sm:$0xff] }
  0x13   :  { %836 = vmatpush.bf16.msra.mxu2 %v1584_v5  ;;  %v1581_v19 = vld [vmem:[#allocation6 + $0x98] sm:$0xff]  ;;  %v1572_v22 = vld [vmem:[#allocation6 + $0x50] sm:$0xff]  ;;  %v1563_v24 = vld [vmem:[#allocation6 + $0x8] sm:$0xff] }
  0x14   :  { %919 = vmatpush.bf16.msra.mxu3 %v1587_v10  ;;  %v1580_v23 = vld [vmem:[#allocation6 + $0x90] sm:$0xff]  ;;  %v1571_v25 = vld [vmem:[#allocation6 + $0x48] sm:$0xff]  ;;  %v1562_v27 = vld [vmem:[#allocation6] sm:$0xff] }
  0x15   :  { %681 = vmatpush.bf16.msra.mxu0 %v1567_v7  ;;  %v1579_v26 = vld [vmem:[#allocation6 + $0x88] sm:$0xff]  ;;  %v1570_v28 = vld [vmem:[#allocation6 + $0x40] sm:$0xff]  ;;  %v1182_v29 = vld [vmem:[#allocation3] sm:$0xf] }
  0x16   :  { %759 = vmatpush.bf16.msra.mxu1 %v1575_v8  ;;  %v1512_v30 = vld [vmem:[#allocation3 + $0xc] sm:$0xf0]  ;;  %v1510_v31 = vld [vmem:[#allocation3 + $0x4] sm:$0xf]  ;;  %v1184_v32 = vld [vmem:[#allocation3 + $0x10] sm:$0xf0] }
  0x17   :  { %837 = vmatpush.bf16.msra.mxu2 %v1583_v9  ;;  %v1578_v33 = vld [vmem:[#allocation6 + $0x80] sm:$0xff]  ;;  %v1190_v34 = vld [vmem:[#allocation3 + $0x8] sm:$0xf]  ;;  %v1513_v35 = vld [vmem:[#allocation3 + $0x14] sm:$0xf0]  ;;  %v1183_v38 = vor.u32 %v1512_v30, %v1182_v29  ;;  %v1187_v39 = vor.u32 %v1510_v31, %v1184_v32 }
  0x18   :  { %920 = vmatpush.bf16.msra.mxu3 %v1586_v14  ;;  %v1515_v36 = vld [vmem:[#allocation3 + $0x2c] sm:$0xf]  ;;  %v1208_v37 = vld [vmem:[#allocation3 + $0x38] sm:$0xf0]  ;;  %v1191_v40 = vor.u32 %v1513_v35, %v1190_v34  ;;  %v1198_v42 = vld [vmem:[#allocation3 + $0x20] sm:$0xf] }
  0x19   :  { %682 = vmatpush.bf16.msra.mxu0 %v1566_v11  ;;  %v1211_v41 = vor.u32 %v1515_v36, %v1208_v37  ;;  %v1516_v43 = vld [vmem:[#allocation3 + $0x2c] sm:$0xf0]  ;;  %v1514_v44 = vld [vmem:[#allocation3 + $0x24] sm:$0xf]  ;;  %v1200_v45 = vld [vmem:[#allocation3 + $0x30] sm:$0xf0] }
  0x1a   :  { %760 = vmatpush.bf16.msra.mxu1 %v1574_v12  ;;  %v1206_v46 = vld [vmem:[#allocation3 + $0x28] sm:$0xf]  ;;  %v1517_v47 = vld [vmem:[#allocation3 + $0x34] sm:$0xf0]  ;;  %v1519_v48 = vld [vmem:[#allocation3 + $0x4c] sm:$0xf]  ;;  %v1199_v50 = vor.u32 %v1516_v43, %v1198_v42  ;;  %v1203_v51 = vor.u32 %v1514_v44, %v1200_v45 }
  0x1b   :  { %838 = vmatpush.bf16.msra.mxu2 %v1582_v13  ;;  %1496 = vmatmul.msk.bf16.vlgmr.msra.gmra.mxu3 %vm636_vm0, %v1195_v20  ;;  %v1224_v49 = vld [vmem:[#allocation3 + $0x58] sm:$0xf0]  ;;  %v1207_v52 = vor.u32 %v1517_v47, %v1206_v46  ;;  %v1214_v54 = vld [vmem:[#allocation3 + $0x40] sm:$0xf]  ;;  %v1520_v55 = vld [vmem:[#allocation3 + $0x4c] sm:$0xf0] }
  0x1c   :  { %v1227_v53 = vor.u32 %v1519_v48, %v1224_v49  ;;  %v1518_v56 = vld [vmem:[#allocation3 + $0x44] sm:$0xf]  ;;  %v1216_v57 = vld [vmem:[#allocation3 + $0x50] sm:$0xf0]  ;;  %v1222_v58 = vld [vmem:[#allocation3 + $0x48] sm:$0xf]  ;;  %v1215_v62 = vor.u32 %v1520_v55, %v1214_v54 }
  0x1d   :  { %683 = vmatpush.bf16.msra.mxu0 %v1565_v17  ;;  %v1521_v59 = vld [vmem:[#allocation3 + $0x54] sm:$0xf0]  ;;  %v1523_v60 = vld [vmem:[#allocation3 + $0x6c] sm:$0xf]  ;;  %v1240_v61 = vld [vmem:[#allocation3 + $0x78] sm:$0xf0]  ;;  %v1219_v63 = vor.u32 %v1518_v56, %v1216_v57 }
  0x1e   :  { %761 = vmatpush.bf16.msra.mxu1 %v1573_v18  ;;  %v1223_v0 = vor.u32 %v1521_v59, %v1222_v58  ;;  %v1243_v1 = vor.u32 %v1523_v60, %v1240_v61  ;;  %v1230_v2 = vld [vmem:[#allocation3 + $0x60] sm:$0xf]  ;;  %v1524_v3 = vld [vmem:[#allocation3 + $0x6c] sm:$0xf0]  ;;  %v1522_v4 = vld [vmem:[#allocation3 + $0x64] sm:$0xf] }
  0x1f   :  { %839 = vmatpush.bf16.msra.mxu2 %v1581_v19  ;;  %v1232_v5 = vld [vmem:[#allocation3 + $0x70] sm:$0xf0]  ;;  %v1238_v6 = vld [vmem:[#allocation3 + $0x68] sm:$0xf]  ;;  %v1525_v7 = vld [vmem:[#allocation3 + $0x74] sm:$0xf0]  ;;  %v1231_v10 = vor.u32 %v1524_v3, %v1230_v2 }
  0x20   :  { %v1527_v8 = vld [vmem:[#allocation3 + $0x8c] sm:$0xf]  ;;  %v1256_v9 = vld [vmem:[#allocation3 + $0x98] sm:$0xf0]  ;;  %v1235_v11 = vor.u32 %v1522_v4, %v1232_v5  ;;  %v1239_v12 = vor.u32 %v1525_v7, %v1238_v6  ;;  %v1246_v14 = vld [vmem:[#allocation3 + $0x80] sm:$0xf] }
  0x21   :  { %684 = vmatpush.bf16.msra.mxu0 %v1564_v21  ;;  %v1259_v13 = vor.u32 %v1527_v8, %v1256_v9  ;;  %v1528_v15 = vld [vmem:[#allocation3 + $0x8c] sm:$0xf0]  ;;  %v1526_v16 = vld [vmem:[#allocation3 + $0x84] sm:$0xf]  ;;  %v1248_v17 = vld [vmem:[#allocation3 + $0x90] sm:$0xf0] }
  0x22   :  { %762 = vmatpush.bf16.msra.mxu1 %v1572_v22  ;;  %v1254_v18 = vld [vmem:[#allocation3 + $0x88] sm:$0xf]  ;;  %v1529_v19 = vld [vmem:[#allocation3 + $0x94] sm:$0xf0]  ;;  %v1531_v20 = vld [vmem:[#allocation3 + $0xac] sm:$0xf]  ;;  %v1247_v22 = vor.u32 %v1528_v15, %v1246_v14 }
  0x23   :  { %840 = vmatpush.bf16.msra.mxu2 %v1580_v23  ;;  %v1272_v21 = vld [vmem:[#allocation3 + $0xb8] sm:$0xf0]  ;;  %v1251_v23 = vor.u32 %v1526_v16, %v1248_v17  ;;  %v1264_v29 = vld [vmem:[#allocation3 + $0xb0] sm:$0xf0]  ;;  %v1270_v30 = vld [vmem:[#allocation3 + $0xa8] sm:$0xf] }
  0x24   :  { %v1533_v31 = vld [vmem:[#allocation3 + $0xb4] sm:$0xf0]  ;;  %v1535_v32 = vld [vmem:[#allocation3 + $0xcc] sm:$0xf]  ;;  %v1286_v42 = vld [vmem:[#allocation3 + $0xc8] sm:$0xf] }
  0x25   :  { %685 = vmatpush.bf16.msra.mxu0 %v1563_v24  ;;  %v1255_v24 = vor.u32 %v1529_v19, %v1254_v18  ;;  %v1271_v36 = vor.u32 %v1533_v31, %v1270_v30  ;;  %v1537_v43 = vld [vmem:[#allocation3 + $0xd4] sm:$0xf0]  ;;  %v1539_v44 = vld [vmem:[#allocation3 + $0xec] sm:$0xf]  ;;  %v1304_v45 = vld [vmem:[#allocation3 + $0xf8] sm:$0xf0] }
  0x26   :  { %763 = vmatpush.bf16.msra.mxu1 %v1571_v25  ;;  %v1275_v25 = vor.u32 %v1531_v20, %v1272_v21  ;;  %v1287_v48 = vor.u32 %v1537_v43, %v1286_v42  ;;  %v1307_v49 = vor.u32 %v1539_v44, %v1304_v45  ;;  %v1302_v54 = vld [vmem:[#allocation3 + $0xe8] sm:$0xf]  ;;  %v1541_v55 = vld [vmem:[#allocation3 + $0xf4] sm:$0xf0]  ;;  %v1543_v56 = vld [vmem:[#allocation3 + $0x10c] sm:$0xf] }
  0x27   :  { %841 = vmatpush.bf16.msra.mxu2 %v1579_v26  ;;  %v1262_v26 = vld [vmem:[#allocation3 + $0xa0] sm:$0xf]  ;;  %v1320_v57 = vld [vmem:[#allocation3 + $0x118] sm:$0xf0]  ;;  %v1303_v60 = vor.u32 %v1541_v55, %v1302_v54  ;;  %v1312_v2 = vld [vmem:[#allocation3 + $0x110] sm:$0xf0] }
  0x28   :  { %v1323_v61 = vor.u32 %v1543_v56, %v1320_v57  ;;  %v1318_v3 = vld [vmem:[#allocation3 + $0x108] sm:$0xf]  ;;  %v1545_v4 = vld [vmem:[#allocation3 + $0x114] sm:$0xf0]  ;;  %v1547_v5 = vld [vmem:[#allocation3 + $0x12c] sm:$0xf] }
  0x29   :  { %686 = vmatpush.bf16.msra.mxu0 %v1562_v27  ;;  %v1532_v27 = vld [vmem:[#allocation3 + $0xac] sm:$0xf0]  ;;  %v1336_v6 = vld [vmem:[#allocation3 + $0x138] sm:$0xf0]  ;;  %v1326_v19 = vld [vmem:[#allocation3 + $0x120] sm:$0xf] }
  0x2a   :  { %764 = vmatpush.bf16.msra.mxu1 %v1570_v28  ;;  %v1530_v28 = vld [vmem:[#allocation3 + $0xa4] sm:$0xf]  ;;  %v1263_v34 = vor.u32 %v1532_v27, %v1262_v26  ;;  %v1548_v21 = vld [vmem:[#allocation3 + $0x12c] sm:$0xf0]  ;;  %v1551_v27 = vld [vmem:[#allocation3 + $0x14c] sm:$0xf] }
  0x2b   :  { %842 = vmatpush.bf16.msra.mxu2 %v1578_v33  ;;  %1497 = vmatmul.msk.bf16.gmra.mxu3 %vm636_vm0, %v1211_v41  ;;  %v1288_v33 = vld [vmem:[#allocation3 + $0xd8] sm:$0xf0]  ;;  %v1267_v35 = vor.u32 %v1530_v28, %v1264_v29  ;;  %v1280_v41 = vld [vmem:[#allocation3 + $0xd0] sm:$0xf0]  ;;  %v1327_v30 = vor.u32 %v1548_v21, %v1326_v19  ;;  %v1350_v54 = vld [vmem:[#allocation3 + $0x148] sm:$0xf] }
  0x2c   :  { %687 = vmatmul.bf16.vlgmr.msra.gmra.mxu0 %v1183_v38  ;;  %v1291_v37 = vor.u32 %v1535_v32, %v1288_v33  ;;  %v1278_v38 = vld [vmem:[#allocation3 + $0xc0] sm:$0xf]  ;;  %v1352_v28 = vld [vmem:[#allocation3 + $0x158] sm:$0xf0]  ;;  %v1553_v55 = vld [vmem:[#allocation3 + $0x154] sm:$0xf0] }
  0x2d   :  { %765 = vmatmul.bf16.vlgmr.msra.gmra.mxu1 %v1187_v39  ;;  %v1536_v39 = vld [vmem:[#allocation3 + $0xcc] sm:$0xf0]  ;;  %v1801_v33 = vld [vmem:[%s1842_s2] ss:$0 sm:$0xff]  ;;  %v1555_v57 = vld [vmem:[#allocation3 + $0x16c] sm:$0xf] }
  0x2e   :  { %843 = vmatmul.bf16.vlgmr.msra.gmra.mxu2 %v1191_v40  ;;  %v1534_v40 = vld [vmem:[#allocation3 + $0xc4] sm:$0xf]  ;;  %v1279_v46 = vor.u32 %v1536_v39, %v1278_v38  ;;  %v1355_v39 = vor.u32 %v1551_v27, %v1352_v28  ;;  %v1366_v19 = vld [vmem:[#allocation3 + $0x168] sm:$0xf]  ;;  %s1758_s2 = smov [#allocation8]  }
  0x2f   :  { %v1283_v47 = vor.u32 %v1534_v40, %v1280_v41  ;;  %s1164_s26 = sshll.u32 %s1758_s2, 4  ;;  %s1165_s26 = int_to_ptr.vmem [resolvable:$true] %s1164_s26 }
  0x3b   :  { %1498 = vmatmul.msk.bf16.gmra.mxu3 %vm636_vm0, %v1227_v53  ;;  %v1296_v53 = vld [vmem:[#allocation3 + $0xf0] sm:$0xf0] }
  0x3c   :  { %692 = vmatmul.bf16.gmra.mxu0 %v1199_v50  ;;  %v1294_v50 = vld [vmem:[#allocation3 + $0xe0] sm:$0xf] }
  0x3d   :  { %770 = vmatmul.bf16.gmra.mxu1 %v1203_v51  ;;  %v1540_v51 = vld [vmem:[#allocation3 + $0xec] sm:$0xf0] }
  0x3e   :  { %848 = vmatmul.bf16.gmra.mxu2 %v1207_v52  ;;  %v1538_v52 = vld [vmem:[#allocation3 + $0xe4] sm:$0xf]  ;;  %v1295_v58 = vor.u32 %v1540_v51, %v1294_v50  ;;  %v1552_v51 = vld [vmem:[#allocation3 + $0x14c] sm:$0xf0] }
  0x3f   :  { %v1299_v59 = vor.u32 %v1538_v52, %v1296_v53  ;;  %v1550_v52 = vld [vmem:[#allocation3 + $0x144] sm:$0xf]  ;;  %v1344_v53 = vld [vmem:[#allocation3 + $0x150] sm:$0xf0] }
  0x4b   :  { %1499 = vmatmul.msk.bf16.gmra.mxu3 %vm636_vm0, %v1243_v1  ;;  %v1542_v1 = vld [vmem:[#allocation3 + $0x104] sm:$0xf] }
  0x4c   :  { %697 = vmatmul.bf16.gmra.mxu0 %v1215_v62  ;;  %v1315_v8 = vor.u32 %v1542_v1, %v1312_v2  ;;  %v1351_v2 = vor.u32 %v1553_v55, %v1350_v54 }
  0x4d   :  { %775 = vmatmul.bf16.gmra.mxu1 %v1219_v63  ;;  %v1310_v63 = vld [vmem:[#allocation3 + $0x100] sm:$0xf] }
  0x4e   :  { %853 = vmatmul.bf16.gmra.mxu2 %v1223_v0  ;;  %v1544_v0 = vld [vmem:[#allocation3 + $0x10c] sm:$0xf0] }
  0x4f   :  { %v1311_v7 = vor.u32 %v1544_v0, %v1310_v63 }
  0x5b   :  { %1500 = vmatmul.msk.bf16.gmra.mxu3 %vm636_vm0, %v1259_v13  ;;  %v1339_v13 = vor.u32 %v1547_v5, %v1336_v6 }
  0x5c   :  { %702 = vmatmul.bf16.gmra.mxu0 %v1231_v10 }
  0x5d   :  { %780 = vmatmul.bf16.gmra.mxu1 %v1235_v11  ;;  %v1319_v11 = vor.u32 %v1545_v4, %v1318_v3 }
  0x5e   :  { %858 = vmatmul.bf16.gmra.mxu2 %v1239_v12 }
  0x6b   :  { %1501 = vmatmul.msk.bf16.gmra.mxu3 %vm636_vm0, %v1275_v25  ;;  %v1549_v25 = vld [vmem:[#allocation3 + $0x134] sm:$0xf0] }
  0x6c   :  { %707 = vmatmul.bf16.gmra.mxu0 %v1247_v22  ;;  %v1546_v22 = vld [vmem:[#allocation3 + $0x124] sm:$0xf] }
  0x6d   :  { %785 = vmatmul.bf16.gmra.mxu1 %v1251_v23  ;;  %v1328_v23 = vld [vmem:[#allocation3 + $0x130] sm:$0xf0] }
  0x6e   :  { %863 = vmatmul.bf16.gmra.mxu2 %v1255_v24  ;;  %v1334_v24 = vld [vmem:[#allocation3 + $0x128] sm:$0xf]  ;;  %v1331_v31 = vor.u32 %v1546_v22, %v1328_v23  ;;  %v1559_v22 = vld [vmem:[#allocation3 + $0x18c] sm:$0xf]  ;;  %v1384_v23 = vld [vmem:[#allocation3 + $0x198] sm:$0xf0] }
  0x7b   :  { %1502 = vmatmul.msk.bf16.gmra.mxu3 %vm636_vm0, %v1291_v37  ;;  %v1335_v37 = vor.u32 %v1549_v25, %v1334_v24 }
  0x7c   :  { %712 = vmatmul.bf16.gmra.mxu0 %v1263_v34 }
  0x7d   :  { %790 = vmatmul.bf16.gmra.mxu1 %v1267_v35 }
  0x7e   :  { %868 = vmatmul.bf16.gmra.mxu2 %v1271_v36 }
  0x8b   :  { %1503 = vmatmul.msk.bf16.gmra.mxu3 %vm636_vm0, %v1307_v49  ;;  %v1342_v49 = vld [vmem:[#allocation3 + $0x140] sm:$0xf] }
  0x8c   :  { %717 = vmatmul.bf16.gmra.mxu0 %v1279_v46 }
  0x8d   :  { %795 = vmatmul.bf16.gmra.mxu1 %v1283_v47 }
  0x8e   :  { %873 = vmatmul.bf16.gmra.mxu2 %v1287_v48 }
  0x9b   :  { %1504 = vmatmul.msk.bf16.gmra.mxu3 %vm636_vm0, %v1323_v61  ;;  %v1347_v61 = vor.u32 %v1550_v52, %v1344_v53 }
  0x9c   :  { %722 = vmatmul.bf16.gmra.mxu0 %v1295_v58  ;;  %v1368_v58 = vld [vmem:[#allocation3 + $0x178] sm:$0xf0] }
  0x9d   :  { %800 = vmatmul.bf16.gmra.mxu1 %v1299_v59  ;;  %v1371_v4 = vor.u32 %v1555_v57, %v1368_v58 }
  0x9e   :  { %878 = vmatmul.bf16.gmra.mxu2 %v1303_v60  ;;  %v922_v62 = vpop.f32.mrf.mxu3  ;;  %v1343_v60 = vor.u32 %v1552_v51, %v1342_v49  ;;  %v1376_v49 = vld [vmem:[#allocation3 + $0x190] sm:$0xf0]  ;;  %v1561_v51 = vld [vmem:[#allocation3 + $0x194] sm:$0xf0] }
  0xa6   :  { %v924_v12 = vpop.f32.mrf.mxu3 }
  0xa9   :  { %v688_v9 = vpop.f32.mrf.mxu0 }
  0xaa   :  { %v766_v10 = vpop.f32.mrf.mxu1 }
  0xab   :  { %1505 = vmatmul.msk.bf16.gmra.mxu3 %vm636_vm0, %v1339_v13  ;;  %v767_v15 = vadd.f32 %v766_v10, %v688_v9 }
  0xac   :  { %727 = vmatmul.bf16.gmra.mxu0 %v1311_v7 }
  0xad   :  { %805 = vmatmul.bf16.gmra.mxu1 %v1315_v8 }
  0xae   :  { %883 = vmatmul.bf16.gmra.mxu2 %v1319_v11  ;;  %v927_v18 = vpop.f32.mrf.mxu3 }
  0xb1   :  { %v844_v14 = vpop.f32.mrf.mxu2  ;;  %v690_v16 = vpop.f32.mrf.mxu0 }
  0xb2   :  { %v768_v17 = vpop.f32.mrf.mxu1  ;;  %v845_v20 = vadd.f32 %v844_v14, %v767_v15  ;;  %v1358_v14 = vld [vmem:[#allocation3 + $0x160] sm:$0xf] }
  0xb3   :  { %v769_v26 = vadd.f32 %v768_v17, %v690_v16  ;;  %v1556_v16 = vld [vmem:[#allocation3 + $0x16c] sm:$0xf0]  ;;  %v1554_v17 = vld [vmem:[#allocation3 + $0x164] sm:$0xf] }
  0xb4   :  { %v923_v32 = vadd.f32 %v922_v62, %v845_v20  ;;  %v1557_v20 = vld [vmem:[#allocation3 + $0x174] sm:$0xf0]  ;;  %v1359_v25 = vor.u32 %v1556_v16, %v1358_v14 }
  0xb6   :  { %v929_v38 = vpop.f32.mrf.mxu3  ;;  %v1079_v41 = vadd.f32 %v1801_v33, %v923_v32 }
  0xb9   :  { %v846_v29 = vpop.f32.mrf.mxu2  ;;  %v693_v35 = vpop.f32.mrf.mxu0 }
  0xba   :  { %v847_v34 = vadd.f32 %v846_v29, %v769_v26  ;;  %v771_v36 = vpop.f32.mrf.mxu1 }
  0xbb   :  { %1506 = vmatmul.msk.bf16.gmra.mxu3 %vm636_vm0, %v1355_v39  ;;  %v772_v45 = vadd.f32 %v771_v36, %v693_v35 }
  0xbc   :  { %v925_v40 = vadd.f32 %v924_v12, %v847_v34  ;;  %732 = vmatmul.bf16.gmra.mxu0 %v1327_v30  ;;  %v1387_v34 = vor.u32 %v1559_v22, %v1384_v23 }
  0xbd   :  { %810 = vmatmul.bf16.gmra.mxu1 %v1331_v31  ;;  %v1367_v31 = vor.u32 %v1557_v20, %v1366_v19 }
  0xbe   :  { %v1080_v42 = vadd.f32 %v1801_v33, %v925_v40  ;;  %888 = vmatmul.bf16.gmra.mxu2 %v1335_v37  ;;  %v932_v48 = vpop.f32.mrf.mxu3 }
  0xc0   :  { %v1592_v43 = vpack.c.bf16 %v1080_v42, %v1079_v41 }
  0xc1   :  { %v849_v44 = vpop.f32.mrf.mxu2  ;;  %v695_v46 = vpop.f32.mrf.mxu0 }
  0xc2   :  { %1593 = vst [vmem:[#allocation8] sm:$0xff] %v1592_v43   ;;  %v773_v47 = vpop.f32.mrf.mxu1  ;;  %v850_v50 = vadd.f32 %v849_v44, %v772_v45  ;;  %v159_v44 = vld [vmem:[#allocation3 + $0x1a8] sm:$0xff]  ;;  %v1374_v45 = vld [vmem:[#allocation3 + $0x180] sm:$0xf] }
  0xc3   :  { %v774_v56 = vadd.f32 %v773_v47, %v695_v46  ;;  %v1560_v47 = vld [vmem:[#allocation3 + $0x18c] sm:$0xf0]  ;;  %v375_v52 = vunpack.c.h.b16 %v159_v44 }
  0xc4   :  { %v928_v62 = vadd.f32 %v927_v18, %v850_v50  ;;  %v1360_v18 = vld [vmem:[#allocation3 + $0x170] sm:$0xf0]  ;;  %v1382_v50 = vld [vmem:[#allocation3 + $0x188] sm:$0xf]  ;;  %v1375_v55 = vor.u32 %v1560_v47, %v1374_v45 }
  0xc5   :  { %v1363_v26 = vor.u32 %v1554_v17, %v1360_v18 }
  0xc6   :  { %v934_v3 = vpop.f32.mrf.mxu3  ;;  %v1081_v6 = vadd.f32 %v1801_v33, %v928_v62 }
  0xc9   :  { %v851_v59 = vpop.f32.mrf.mxu2  ;;  %v698_v0 = vpop.f32.mrf.mxu0 }
  0xca   :  { %v852_v63 = vadd.f32 %v851_v59, %v774_v56  ;;  %v776_v1 = vpop.f32.mrf.mxu1 }
  0xcb   :  { %1507 = vmatmul.msk.bf16.gmra.mxu3 %vm636_vm0, %v1371_v4  ;;  %v777_v10 = vadd.f32 %v776_v1, %v698_v0 }
  0xcc   :  { %v930_v5 = vadd.f32 %v929_v38, %v852_v63  ;;  %737 = vmatmul.bf16.gmra.mxu0 %v1343_v60  ;;  %v431_v63 = vpack.c.b16 %v375_v52, %v375_v52 }
  0xcd   :  { %815 = vmatmul.bf16.gmra.mxu1 %v1347_v61  ;;  %v1383_v61 = vor.u32 %v1561_v51, %v1382_v50 }
  0xce   :  { %v1082_v7 = vadd.f32 %v1801_v33, %v930_v5  ;;  %893 = vmatmul.bf16.gmra.mxu2 %v1351_v2  ;;  %v937_v13 = vpop.f32.mrf.mxu3 }
  0xd0   :  { %v1597_v8 = vpack.c.bf16 %v1082_v7, %v1081_v6 }
  0xd1   :  { %v854_v9 = vpop.f32.mrf.mxu2  ;;  %v700_v11 = vpop.f32.mrf.mxu0 }
  0xd2   :  { %1654 = vst [vmem:[#allocation8 + $0x8] sm:$0xff] %v1597_v8   ;;  %v778_v12 = vpop.f32.mrf.mxu1  ;;  %v855_v15 = vadd.f32 %v854_v9, %v777_v10  ;;  %v158_v8 = vld [vmem:[#allocation3 + $0x1a0] sm:$0xff] }
  0xd3   :  { %v779_v21 = vadd.f32 %v778_v12, %v700_v11  ;;  %v372_v10 = vunpack.c.l.b16 %v158_v8  ;;  %v373_v11 = vunpack.c.h.b16 %v158_v8 }
  0xd4   :  { %v933_v27 = vadd.f32 %v932_v48, %v855_v15  ;;  %v1558_v48 = vld [vmem:[#allocation3 + $0x184] sm:$0xf] }
  0xd5   :  { %v1379_v56 = vor.u32 %v1558_v48, %v1376_v49  ;;  %v428_v16 = vpack.c.b16 %v372_v10, %v372_v10  ;;  %v429_v17 = vpack.c.b16 %v373_v11, %v373_v11 }
  0xd6   :  { %v939_v32 = vpop.f32.mrf.mxu3  ;;  %v1083_v36 = vadd.f32 %v1801_v33, %v933_v27 }
  0xd9   :  { %v856_v24 = vpop.f32.mrf.mxu2  ;;  %v703_v29 = vpop.f32.mrf.mxu0 }
  0xda   :  { %v857_v28 = vadd.f32 %v856_v24, %v779_v21  ;;  %v781_v30 = vpop.f32.mrf.mxu1 }
  0xdb   :  { %1508 = vmatmul.msk.bf16.gmra.mxu3 %vm636_vm0, %v1387_v34  ;;  %v782_v40 = vadd.f32 %v781_v30, %v703_v29 }
  0xdc   :  { %v935_v35 = vadd.f32 %v934_v3, %v857_v28  ;;  %742 = vmatmul.bf16.gmra.mxu0 %v1359_v25 }
  0xdd   :  { %820 = vmatmul.bf16.gmra.mxu1 %v1363_v26 }
  0xde   :  { %v1084_v37 = vadd.f32 %v1801_v33, %v935_v35  ;;  %898 = vmatmul.bf16.gmra.mxu2 %v1367_v31  ;;  %v942_v43 = vpop.f32.mrf.mxu3 }
  0xe0   :  { %v1602_v38 = vpack.c.bf16 %v1084_v37, %v1083_v36 }
  0xe1   :  { %v859_v39 = vpop.f32.mrf.mxu2  ;;  %v705_v41 = vpop.f32.mrf.mxu0 }
  0xe2   :  { %1655 = vst [vmem:[#allocation8 + $0x10] sm:$0xff] %v1602_v38   ;;  %v783_v42 = vpop.f32.mrf.mxu1  ;;  %v860_v46 = vadd.f32 %v859_v39, %v782_v40 }
  0xe3   :  { %v784_v53 = vadd.f32 %v783_v42, %v705_v41 }
  0xe4   :  { %v938_v57 = vadd.f32 %v937_v13, %v860_v46  ;;  %v374_v13 = vunpack.c.l.b16 %v159_v44 }
  0xe6   :  { %v944_v62 = vpop.f32.mrf.mxu3  ;;  %v1085_v1 = vadd.f32 %v1801_v33, %v938_v57  ;;  %v430_v22 = vpack.c.b16 %v374_v13, %v374_v13 }
  0xe9   :  { %v861_v54 = vpop.f32.mrf.mxu2  ;;  %v708_v59 = vpop.f32.mrf.mxu0 }
  0xea   :  { %v862_v58 = vadd.f32 %v861_v54, %v784_v53  ;;  %v786_v60 = vpop.f32.mrf.mxu1 }
  0xeb   :  { %1509 = vmatmul.msk.bf16.gmra.mxu3 %vm636_vm0, %v431_v63  ;;  %v787_v5 = vadd.f32 %v786_v60, %v708_v59 }
  0xec   :  { %v940_v0 = vadd.f32 %v939_v32, %v862_v58  ;;  %747 = vmatmul.bf16.gmra.mxu0 %v1375_v55 }
  0xed   :  { %825 = vmatmul.bf16.gmra.mxu1 %v1379_v56 }
  0xee   :  { %v1086_v2 = vadd.f32 %v1801_v33, %v940_v0  ;;  %903 = vmatmul.bf16.gmra.mxu2 %v1383_v61  ;;  %v947_v9 = vpop.f32.mrf.mxu3 }
  0xf0   :  { %v1607_v3 = vpack.c.bf16 %v1086_v2, %v1085_v1 }
  0xf1   :  { %v864_v4 = vpop.f32.mrf.mxu2  ;;  %v710_v6 = vpop.f32.mrf.mxu0 }
  0xf2   :  { %1656 = vst [vmem:[#allocation8 + $0x18] sm:$0xff] %v1607_v3   ;;  %v788_v7 = vpop.f32.mrf.mxu1  ;;  %v865_v12 = vadd.f32 %v864_v4, %v787_v5 }
  0xf3   :  { %v789_v14 = vadd.f32 %v788_v7, %v710_v6 }
  0xf4   :  { %v943_v18 = vadd.f32 %v942_v43, %v865_v12 }
  0xf6   :  { %v949_v23 = vpop.f32.mrf.mxu3  ;;  %v1087_v25 = vadd.f32 %v1801_v33, %v943_v18 }
  0xf9   :  { %v866_v15 = vpop.f32.mrf.mxu2  ;;  %v713_v20 = vpop.f32.mrf.mxu0 }
  0xfa   :  { %v867_v19 = vadd.f32 %v866_v15, %v789_v14  ;;  %v791_v21 = vpop.f32.mrf.mxu1 }
  0xfb   :  { %v792_v29 = vadd.f32 %v791_v21, %v713_v20 }
  0xfc   :  { %v945_v24 = vadd.f32 %v944_v62, %v867_v19  ;;  %752 = vmatmul.bf16.gmra.mxu0 %v428_v16 }
  0xfd   :  { %830 = vmatmul.bf16.gmra.mxu1 %v429_v17 }
  0xfe   :  { %v1088_v26 = vadd.f32 %v1801_v33, %v945_v24  ;;  %908 = vmatmul.bf16.gmra.mxu2 %v430_v22  ;;  %v952_v32 = vpop.f32.mrf.mxu3 }
 0x100   :  { %v1612_v27 = vpack.c.bf16 %v1088_v26, %v1087_v25 }
 0x101   :  { %v869_v28 = vpop.f32.mrf.mxu2  ;;  %v715_v30 = vpop.f32.mrf.mxu0 }
 0x102   :  { %1657 = vst [vmem:[#allocation8 + $0x20] sm:$0xff] %v1612_v27   ;;  %v793_v31 = vpop.f32.mrf.mxu1  ;;  %v870_v34 = vadd.f32 %v869_v28, %v792_v29 }
 0x103   :  { %v794_v35 = vadd.f32 %v793_v31, %v715_v30 }
 0x104   :  { %v948_v37 = vadd.f32 %v947_v9, %v870_v34 }
 0x106   :  { %v954_v41 = vpop.f32.mrf.mxu3  ;;  %v1089_v43 = vadd.f32 %v1801_v33, %v948_v37 }
 0x109   :  { %v871_v36 = vpop.f32.mrf.mxu2  ;;  %v718_v39 = vpop.f32.mrf.mxu0 }
 0x10a   :  { %v872_v38 = vadd.f32 %v871_v36, %v794_v35  ;;  %v796_v40 = vpop.f32.mrf.mxu1 }
 0x10b   :  { %v797_v47 = vadd.f32 %v796_v40, %v718_v39 }
 0x10c   :  { %v950_v42 = vadd.f32 %v949_v23, %v872_v38 }
 0x10e   :  { %v1090_v44 = vadd.f32 %v1801_v33, %v950_v42  ;;  %v957_v50 = vpop.f32.mrf.mxu3 }
 0x110   :  { %v1617_v45 = vpack.c.bf16 %v1090_v44, %v1089_v43 }
 0x111   :  { %v874_v46 = vpop.f32.mrf.mxu2  ;;  %v720_v48 = vpop.f32.mrf.mxu0 }
 0x112   :  { %1658 = vst [vmem:[#allocation8 + $0x28] sm:$0xff] %v1617_v45   ;;  %v798_v49 = vpop.f32.mrf.mxu1  ;;  %v875_v51 = vadd.f32 %v874_v46, %v797_v47 }
 0x113   :  { %v799_v52 = vadd.f32 %v798_v49, %v720_v48 }
 0x114   :  { %v953_v54 = vadd.f32 %v952_v32, %v875_v51 }
 0x116   :  { %v959_v58 = vpop.f32.mrf.mxu3  ;;  %v1091_v60 = vadd.f32 %v1801_v33, %v953_v54 }
 0x119   :  { %v876_v53 = vpop.f32.mrf.mxu2  ;;  %v723_v56 = vpop.f32.mrf.mxu0 }
 0x11a   :  { %v877_v55 = vadd.f32 %v876_v53, %v799_v52  ;;  %v801_v57 = vpop.f32.mrf.mxu1 }
 0x11b   :  { %v802_v0 = vadd.f32 %v801_v57, %v723_v56 }
 0x11c   :  { %v955_v59 = vadd.f32 %v954_v41, %v877_v55 }
 0x11e   :  { %v1092_v61 = vadd.f32 %v1801_v33, %v955_v59  ;;  %v962_v3 = vpop.f32.mrf.mxu3 }
 0x120   :  { %v1622_v62 = vpack.c.bf16 %v1092_v61, %v1091_v60 }
 0x121   :  { %v879_v63 = vpop.f32.mrf.mxu2  ;;  %v725_v1 = vpop.f32.mrf.mxu0 }
 0x122   :  { %1659 = vst [vmem:[#allocation8 + $0x30] sm:$0xff] %v1622_v62   ;;  %v803_v2 = vpop.f32.mrf.mxu1  ;;  %v880_v4 = vadd.f32 %v879_v63, %v802_v0 }
 0x123   :  { %v804_v5 = vadd.f32 %v803_v2, %v725_v1 }
 0x124   :  { %v958_v7 = vadd.f32 %v957_v50, %v880_v4 }
 0x126   :  { %v964_v11 = vpop.f32.mrf.mxu3  ;;  %v1093_v13 = vadd.f32 %v1801_v33, %v958_v7 }
 0x129   :  { %v881_v6 = vpop.f32.mrf.mxu2  ;;  %v728_v9 = vpop.f32.mrf.mxu0 }
 0x12a   :  { %v882_v8 = vadd.f32 %v881_v6, %v804_v5  ;;  %v806_v10 = vpop.f32.mrf.mxu1 }
 0x12b   :  { %v807_v17 = vadd.f32 %v806_v10, %v728_v9 }
 0x12c   :  { %v960_v12 = vadd.f32 %v959_v58, %v882_v8 }
 0x12e   :  { %v1094_v14 = vadd.f32 %v1801_v33, %v960_v12  ;;  %v967_v20 = vpop.f32.mrf.mxu3 }
 0x130   :  { %v1627_v15 = vpack.c.bf16 %v1094_v14, %v1093_v13 }
 0x131   :  { %v884_v16 = vpop.f32.mrf.mxu2  ;;  %v730_v18 = vpop.f32.mrf.mxu0 }
 0x132   :  { %1660 = vst [vmem:[#allocation8 + $0x38] sm:$0xff] %v1627_v15   ;;  %v808_v19 = vpop.f32.mrf.mxu1  ;;  %v885_v21 = vadd.f32 %v884_v16, %v807_v17 }
 0x133   :  { %v809_v22 = vadd.f32 %v808_v19, %v730_v18 }
 0x134   :  { %v963_v24 = vadd.f32 %v962_v3, %v885_v21 }
 0x136   :  { %v969_v28 = vpop.f32.mrf.mxu3  ;;  %v1095_v30 = vadd.f32 %v1801_v33, %v963_v24 }
 0x139   :  { %v886_v23 = vpop.f32.mrf.mxu2  ;;  %v733_v26 = vpop.f32.mrf.mxu0 }
 0x13a   :  { %v887_v25 = vadd.f32 %v886_v23, %v809_v22  ;;  %v811_v27 = vpop.f32.mrf.mxu1 }
 0x13b   :  { %v812_v35 = vadd.f32 %v811_v27, %v733_v26 }
 0x13c   :  { %v965_v29 = vadd.f32 %v964_v11, %v887_v25 }
 0x13e   :  { %v1096_v31 = vadd.f32 %v1801_v33, %v965_v29  ;;  %v972_v38 = vpop.f32.mrf.mxu3 }
 0x140   :  { %v1632_v32 = vpack.c.bf16 %v1096_v31, %v1095_v30 }
 0x141   :  { %v889_v34 = vpop.f32.mrf.mxu2  ;;  %v735_v36 = vpop.f32.mrf.mxu0 }
 0x142   :  { %1661 = vst [vmem:[#allocation8 + $0x40] sm:$0xff] %v1632_v32   ;;  %v813_v37 = vpop.f32.mrf.mxu1  ;;  %v890_v39 = vadd.f32 %v889_v34, %v812_v35 }
 0x143   :  { %v814_v40 = vadd.f32 %v813_v37, %v735_v36 }
 0x144   :  { %v968_v42 = vadd.f32 %v967_v20, %v890_v39 }
 0x146   :  { %v974_v46 = vpop.f32.mrf.mxu3  ;;  %v1097_v48 = vadd.f32 %v1801_v33, %v968_v42 }
 0x149   :  { %v891_v41 = vpop.f32.mrf.mxu2  ;;  %v738_v44 = vpop.f32.mrf.mxu0 }
 0x14a   :  { %v892_v43 = vadd.f32 %v891_v41, %v814_v40  ;;  %v816_v45 = vpop.f32.mrf.mxu1 }
 0x14b   :  { %v817_v52 = vadd.f32 %v816_v45, %v738_v44 }
 0x14c   :  { %v970_v47 = vadd.f32 %v969_v28, %v892_v43 }
 0x14e   :  { %v1098_v49 = vadd.f32 %v1801_v33, %v970_v47  ;;  %v977_v55 = vpop.f32.mrf.mxu3 }
 0x150   :  { %v1637_v50 = vpack.c.bf16 %v1098_v49, %v1097_v48 }
 0x151   :  { %v894_v51 = vpop.f32.mrf.mxu2  ;;  %v740_v53 = vpop.f32.mrf.mxu0 }
 0x152   :  { %1662 = vst [vmem:[#allocation8 + $0x48] sm:$0xff] %v1637_v50   ;;  %v818_v54 = vpop.f32.mrf.mxu1  ;;  %v895_v56 = vadd.f32 %v894_v51, %v817_v52 }
 0x153   :  { %v819_v57 = vadd.f32 %v818_v54, %v740_v53 }
 0x154   :  { %v973_v59 = vadd.f32 %v972_v38, %v895_v56 }
 0x156   :  { %v979_v63 = vpop.f32.mrf.mxu3  ;;  %v1099_v1 = vadd.f32 %v1801_v33, %v973_v59 }
 0x159   :  { %v896_v58 = vpop.f32.mrf.mxu2  ;;  %v743_v61 = vpop.f32.mrf.mxu0 }
 0x15a   :  { %v897_v60 = vadd.f32 %v896_v58, %v819_v57  ;;  %v821_v62 = vpop.f32.mrf.mxu1 }
 0x15b   :  { %v822_v5 = vadd.f32 %v821_v62, %v743_v61 }
 0x15c   :  { %v975_v0 = vadd.f32 %v974_v46, %v897_v60 }
 0x15e   :  { %v1100_v2 = vadd.f32 %v1801_v33, %v975_v0  ;;  %v982_v8 = vpop.f32.mrf.mxu3 }
 0x160   :  { %v1642_v3 = vpack.c.bf16 %v1100_v2, %v1099_v1 }
 0x161   :  { %v899_v4 = vpop.f32.mrf.mxu2  ;;  %v745_v6 = vpop.f32.mrf.mxu0 }
 0x162   :  { %1663 = vst [vmem:[#allocation8 + $0x50] sm:$0xff] %v1642_v3   ;;  %v823_v7 = vpop.f32.mrf.mxu1  ;;  %v900_v9 = vadd.f32 %v899_v4, %v822_v5 }
 0x163   :  { %v824_v10 = vadd.f32 %v823_v7, %v745_v6 }
 0x164   :  { %v978_v12 = vadd.f32 %v977_v55, %v900_v9 }
 0x166   :  { %v984_v16 = vpop.f32.mrf.mxu3  ;;  %v1101_v18 = vadd.f32 %v1801_v33, %v978_v12 }
 0x169   :  { %v901_v11 = vpop.f32.mrf.mxu2  ;;  %v748_v14 = vpop.f32.mrf.mxu0 }
 0x16a   :  { %v902_v13 = vadd.f32 %v901_v11, %v824_v10  ;;  %v826_v15 = vpop.f32.mrf.mxu1 }
 0x16b   :  { %v827_v22 = vadd.f32 %v826_v15, %v748_v14 }
 0x16c   :  { %v980_v17 = vadd.f32 %v979_v63, %v902_v13 }
 0x16e   :  { %v1102_v19 = vadd.f32 %v1801_v33, %v980_v17  ;;  %v987_v25 = vpop.f32.mrf.mxu3 }
 0x170   :  { %v1647_v20 = vpack.c.bf16 %v1102_v19, %v1101_v18 }
 0x171   :  { %v904_v21 = vpop.f32.mrf.mxu2  ;;  %v750_v23 = vpop.f32.mrf.mxu0 }
 0x172   :  { %1664 = vst [vmem:[#allocation8 + $0x58] sm:$0xff] %v1647_v20   ;;  %v828_v24 = vpop.f32.mrf.mxu1  ;;  %v905_v26 = vadd.f32 %v904_v21, %v827_v22 }
 0x173   :  { %v829_v27 = vadd.f32 %v828_v24, %v750_v23 }
 0x174   :  { %v983_v29 = vadd.f32 %v982_v8, %v905_v26 }
 0x176   :  { %v989_v34 = vpop.f32.mrf.mxu3  ;;  %v1103_v36 = vadd.f32 %v1801_v33, %v983_v29 }
 0x179   :  { %v906_v28 = vpop.f32.mrf.mxu2  ;;  %v753_v31 = vpop.f32.mrf.mxu0 }
 0x17a   :  { %v907_v30 = vadd.f32 %v906_v28, %v829_v27  ;;  %v831_v32 = vpop.f32.mrf.mxu1 }
 0x17b   :  { %v832_v38 = vadd.f32 %v831_v32, %v753_v31 }
 0x17c   :  { %v985_v35 = vadd.f32 %v984_v16, %v907_v30 }
 0x17e   :  { %v1104_v37 = vadd.f32 %v1801_v33, %v985_v35 }
 0x180   :  { %v1652_v39 = vpack.c.bf16 %v1104_v37, %v1103_v36 }
 0x181   :  { %v909_v40 = vpop.f32.mrf.mxu2  ;;  %v755_v42 = vpop.f32.mrf.mxu0 }
 0x182   :  { %1665 = vst [vmem:[#allocation8 + $0x60] sm:$0xff] %v1652_v39   ;;  %v910_v41 = vadd.f32 %v909_v40, %v832_v38  ;;  %v833_v43 = vpop.f32.mrf.mxu1 }
 0x184   :  { %v988_v44 = vadd.f32 %v987_v25, %v910_v41 }
 0x186   :  { %v1105_v45 = vadd.f32 %v1801_v33, %v988_v44 }
 0x188   :  { %v1132_v46 = vpack.c.bf16 %v1105_v45, %v1105_v45 }
 0x189   :  { %v911_v47 = vpop.f32.mrf.mxu2 }
 0x18a   :  { %1159 = vst [vmem:[#allocation8 + $0x68] sm:$0xf] %v1132_v46 }
 0x18b   :  { %1172 = dma.vmem_to_hbm [thread:$0]  %s1165_s26, 1728, %s1167_s29, [#allocation5], %s1756_s24, %s1756_s24, %s1757_s25  }
 0x18c   :  { %1750 = dma.done.wait [#allocation5], 1728  }
 0x18d   :  { %1751 = vsyncadd [#allocation5], 4294965568 }
 0x18e   :  { %1177 = vsyncpa [#allocation4], 1 }
 0x18f   :  { %1178 = vsyncpa [#allocation7], 1 }
 0x190   :  { %1179 = vsyncpa [#allocation5], 1 }

</bundles_post_ra>
